<compile_context>
chip_gen: v6e
topology: v6e:2x2x1
jax: 0.10.0
libtpu: 0.0.40
codegen_flags: <defaults>
</compile_context>

<pallas_src>
from dataclasses import dataclass
from functools import partial

import jax
import jax.numpy as jnp
from jax.experimental import pallas as pl
from jax.experimental.pallas import tpu as pltpu


@dataclass
class DetectionLossConfig:
    heatmap_loss_weight: float
    offset_loss_weight: float
    size_loss_weight: float
    heading_loss_weight: float
    heatmap_threshold: float
    heatmap_norm_scale: float
    gamma: float


@dataclass
class DetectionLossMetadata:
    total_loss: jax.Array
    heatmap_loss: jax.Array
    offset_loss: jax.Array
    size_loss: jax.Array
    heading_loss: jax.Array


def _loss_partial_kernel(pred_ref, targ_ref, acc_ref, *,
                         heatmap_threshold, gamma, hw, tile, inner_steps,
                         needs_mask):
    # pred_ref / targ_ref : (B, 7, TILE) tiles in native dtype
    # acc_ref             : (5, B, TILE) f32 accumulator (output block, resident
    #                       across the inner "arbitrary" grid axis)
    k = pl.program_id(1)

    @pl.when(k == 0)
    def _():
        acc_ref[...] = jnp.zeros_like(acc_ref)

    pred = pred_ref[...].astype(jnp.float32)      # upcast in-kernel (bf16-friendly DMA)
    targ = targ_ref[...].astype(jnp.float32)

    t_heat = targ[:, 0, :]                        # (B, TILE) ground-truth heatmap
    x = pred[:, 0, :]                             # (B, TILE) heatmap logits

    mask = (t_heat > heatmap_threshold).astype(jnp.float32)

    if needs_mask:
        start = (pl.program_id(0) * inner_steps + k) * tile
        lane = jax.lax.broadcasted_iota(jnp.int32, t_heat.shape, 1) + start
        valid = (lane < hw).astype(jnp.float32)
        mask = mask * valid

    # Focal loss from logits using stable log-sigmoid identities:
    #   log(sigmoid(x))   = min(x, 0)  - log1p(exp(-|x|))
    #   log(1-sigmoid(x)) = min(-x, 0) - log1p(exp(-|x|))
    sp = jnp.log1p(jnp.exp(-jnp.abs(x)))
    log_p = jnp.minimum(x, 0.0) - sp
    log_1mp = jnp.minimum(-x, 0.0) - sp

    y = mask * t_heat
    bce = y * log_p + (1.0 - y) * log_1mp         # <= 0
    if gamma == 2.0:                              # VPU fast path (no float pow)
        t = 1.0 - jnp.exp(bce)
        f_loss = -(t * t) * bce
    else:
        f_loss = -((1.0 - jnp.exp(bce)) ** gamma) * bce
    if needs_mask:
        f_loss = f_loss * valid                   # focal sums over ALL elements

    w = mask * t_heat                             # heatmap weight for masked MSE

    def wmse(c0, c1):
        d = pred[:, c0:c1, :] - targ[:, c0:c1, :]
        return w * jnp.sum(d * d, axis=1)         # (B, TILE)

    # Pure VPU accumulation; the cross-lane reduce happens once, in the wrapper.
    acc_ref[0] += f_loss
    acc_ref[1] += mask
    acc_ref[2] += wmse(1, 3)
    acc_ref[3] += wmse(3, 5)
    acc_ref[4] += wmse(5, 7)


def detection_loss_pallas(predictions, targets, config: DetectionLossConfig):
    B, C, H, W = predictions.shape
    assert C == 7, "expected 7 channels (heatmap, off_x, off_y, len, wid, sin, cos)"
    HW = H * W
    LANE = 128
    NSPLIT = 2   # 2 TensorCores on v7x; harmless 2-step serial loop on v5e/v6e

    pred = predictions.reshape(B, C, HW)          # keep native dtype
    targ = targets.reshape(B, C, HW)
    itemsize = jnp.dtype(pred.dtype).itemsize

    # --- tile sizing against scoped VMEM (12 MiB budget fits v5e's 16 MiB default) ---
    sub_b = -(-B // 8) * 8                        # B padded to sublane multiple (f32 acc)
    bytes_per_lane = (2 * 2 * B * 8 * itemsize    # 2 inputs x 2 pipeline bufs, C=7 -> 8 sublanes
                      + 2 * 5 * sub_b * 4)        # accumulator output block, double-buffered
    budget = 12 * 1024 * 1024
    tile_max = max(LANE, min(8192, (budget // bytes_per_lane) // LANE * LANE))

    per_split = -(-HW // NSPLIT)                  # lanes per core-split (ceil)
    tile = min(tile_max, -(-per_split // LANE) * LANE)
    inner_steps = -(-per_split // tile)
    hw_pad = NSPLIT * inner_steps * tile
    needs_mask = hw_pad != HW
    if needs_mask:
        padw = ((0, 0), (0, 0), (0, hw_pad - HW))
        pred = jnp.pad(pred, padw)
        targ = jnp.pad(targ, padw)

    kernel = partial(
        _loss_partial_kernel,
        heatmap_threshold=float(config.heatmap_threshold),
        gamma=float(config.gamma),
        hw=HW, tile=tile, inner_steps=inner_steps, needs_mask=needs_mask,
    )

    cost = pl.CostEstimate(
        flops=int(60 * B * HW),
        transcendentals=int(4 * B * HW),
        bytes_accessed=int(2 * B * C * HW * itemsize),
    )

    partials = pl.pallas_call(
        kernel,
        out_shape=jax.ShapeDtypeStruct((NSPLIT, 5, B, tile), jnp.float32),
        grid_spec=pltpu.PrefetchScalarGridSpec(
            num_scalar_prefetch=0,
            grid=(NSPLIT, inner_steps),
            in_specs=[
                pl.BlockSpec((B, C, tile), lambda o, k: (0, 0, o * inner_steps + k)),
                pl.BlockSpec((B, C, tile), lambda o, k: (0, 0, o * inner_steps + k)),
            ],
            out_specs=pl.BlockSpec((None, 5, B, tile), lambda o, k: (o, 0, 0, 0)),
        ),
        compiler_params=pltpu.CompilerParams(
            dimension_semantics=("parallel", "arbitrary"),
        ),
        cost_estimate=cost,
    )(pred, targ)

    sums = jnp.sum(partials, axis=(0, 2, 3))      # (5,) final reduce of lane partials
    focal_sum, count = sums[0], sums[1]
    off_sum, size_sum, head_sum = sums[2], sums[3], sums[4]

    # Guard 0/0 when no heatmap element exceeds the threshold (reference would NaN).
    count = jnp.maximum(count, 1.0)

    heatmap_loss = focal_sum / count
    offset_loss = off_sum / count
    size_loss = size_sum / count
    heading_loss = head_sum / count

    total_loss = (
        heatmap_loss * config.heatmap_loss_weight
        + offset_loss * config.offset_loss_weight
        + size_loss * config.size_loss_weight
        + heading_loss * config.heading_loss_weight
    )
    meta = DetectionLossMetadata(
        total_loss, heatmap_loss, offset_loss, size_loss, heading_loss
    )
    return total_loss, meta


# -------- pure-JAX reference (direct translation of the PyTorch code) --------
def _ref_focal(pred_hm, targ_hm, thr, gamma):
    mask = targ_hm > thr
    y = mask * targ_hm
    num = jnp.count_nonzero(mask)
    bce = y * jnp.log(pred_hm) + (1 - y) * jnp.log(1 - pred_hm)
    f = -1 * (1 - jnp.exp(bce)) ** gamma * bce
    return jnp.sum(f) / num


def _ref_wmse(targets, preds, heatmap, thr):
    mse = jnp.sum((preds - targets) ** 2, axis=1)
    hm = heatmap.reshape(heatmap.shape[0], -1, heatmap.shape[-1])
    mask = hm > thr
    num = jnp.count_nonzero(mask)
    return jnp.sum(mask * hm * mse) / num


def detection_loss_ref(predictions, targets, cfg):
    t_hm = targets[:, 0:1]
    p_hm = jax.nn.sigmoid(predictions[:, 0:1])
    hl = _ref_focal(p_hm, t_hm, cfg.heatmap_threshold, cfg.gamma)
    ol = _ref_wmse(targets[:, 1:3], predictions[:, 1:3], t_hm, cfg.heatmap_threshold)
    sl = _ref_wmse(targets[:, 3:5], predictions[:, 3:5], t_hm, cfg.heatmap_threshold)
    dl = _ref_wmse(targets[:, 5:7], predictions[:, 5:7], t_hm, cfg.heatmap_threshold)
    total = (hl * cfg.heatmap_loss_weight + ol * cfg.offset_loss_weight
             + sl * cfg.size_loss_weight + dl * cfg.heading_loss_weight)
    return total, (hl, ol, sl, dl)


def _check(cfg, B, C, H, W, seed):
    key = jax.random.PRNGKey(seed)
    k1, k2, k3 = jax.random.split(key, 3)
    predictions = jax.random.normal(k1, (B, C, H, W), dtype=jnp.float32)
    targets = jax.random.normal(k2, (B, C, H, W), dtype=jnp.float32)
    # ground-truth heatmap channel lives in [0, 1]
    targets = targets.at[:, 0].set(jax.random.uniform(k3, (B, H, W), dtype=jnp.float32))

    total, meta = detection_loss_pallas(predictions, targets, cfg)
    total = jax.block_until_ready(total)

    ref_total, (r_hl, r_ol, r_sl, r_dl) = detection_loss_ref(predictions, targets, cfg)

    assert jnp.allclose(total, ref_total, rtol=1e-4, atol=1e-5), (total, ref_total)
    assert jnp.allclose(meta.heatmap_loss, r_hl, rtol=1e-4, atol=1e-5)
    assert jnp.allclose(meta.offset_loss, r_ol, rtol=1e-4, atol=1e-5)
    assert jnp.allclose(meta.size_loss, r_sl, rtol=1e-4, atol=1e-5)
    assert jnp.allclose(meta.heading_loss, r_dl, rtol=1e-4, atol=1e-5)


if __name__ == "__main__":
    cfg = DetectionLossConfig(
        heatmap_loss_weight=100.0,
        offset_loss_weight=10.0,
        size_loss_weight=1.0,
        heading_loss_weight=1.0,
        heatmap_threshold=0.01,
        heatmap_norm_scale=20.0,
        gamma=2.0,
    )

    # main case (HW divisible by the tiling)
    _check(cfg, B=2, C=7, H=16, W=16, seed=0)
    # ragged case exercising the pad + valid-lane-mask path
    _check(cfg, B=2, C=7, H=10, W=10, seed=1)

    print("KERNEL_OK")
</pallas_src>

<mosaic_0001>
module attributes {stable_mosaic.version = 11 : i64} {
  func.func @_loss_partial_kernel(%arg0: i32, %arg1: i32, %arg2: memref<2x7x128xf32, #tpu.memory_space<vmem>>, %arg3: memref<2x7x128xf32, #tpu.memory_space<vmem>>, %arg4: memref<1x5x2x128xf32, #tpu.memory_space<vmem>>) attributes {dimension_semantics = [#tpu.dimension_semantics<parallel>, #tpu.dimension_semantics<arbitrary>], iteration_bounds = array<i64: 2, 1>, scalar_prefetch = 0 : i64, scratch_operands = 0 : i64, tpu.core_type = #tpu.core_type<tc>, window_params = [{transform_indices = @transform_0, window_bounds = array<i64: 2, 7, 128>}, {transform_indices = @transform_1, window_bounds = array<i64: 2, 7, 128>}, {transform_indices = @transform_2, window_bounds = array<i64: 1, 5, 2, 128>}]} {
    %c0_i32 = arith.constant 0 : i32
    %0 = arith.cmpi eq, %arg1, %c0_i32 : i32
    %1 = arith.extui %0 : i1 to i32
    %c0_i32_0 = arith.constant 0 : i32
    %2 = arith.cmpi ne, %1, %c0_i32_0 : i32
    scf.if %2 {
      %cst_52 = arith.constant 0.000000e+00 : f32
      %88 = vector.broadcast %cst_52 : f32 to vector<5x2x128xf32>
      %c0_53 = arith.constant 0 : index
      %c0_54 = arith.constant 0 : index
      %c0_55 = arith.constant 0 : index
      %c0_56 = arith.constant 0 : index
      %89 = vector.load %arg4[%c0_53, %c0_54, %c0_55, %c0_56] : memref<1x5x2x128xf32, #tpu.memory_space<vmem>>, vector<1x5x2x128xf32>
      %90 = vector.shape_cast %89 : vector<1x5x2x128xf32> to vector<5x2x128xf32>
      %91 = vector.shape_cast %88 : vector<5x2x128xf32> to vector<1x5x2x128xf32>
      tpu.vector_store %arg4[%c0_53, %c0_54, %c0_55, %c0_56], %91 {strides = array<i32>} : memref<1x5x2x128xf32, #tpu.memory_space<vmem>>, vector<1x5x2x128xf32>,
    } else {
    }
    %c0 = arith.constant 0 : index
    %c0_1 = arith.constant 0 : index
    %c0_2 = arith.constant 0 : index
    %3 = vector.load %arg2[%c0, %c0_1, %c0_2] : memref<2x7x128xf32, #tpu.memory_space<vmem>>, vector<2x7x128xf32>
    %c0_3 = arith.constant 0 : index
    %c0_4 = arith.constant 0 : index
    %c0_5 = arith.constant 0 : index
    %4 = vector.load %arg3[%c0_3, %c0_4, %c0_5] : memref<2x7x128xf32, #tpu.memory_space<vmem>>, vector<2x7x128xf32>
    %5 = vector.extract_strided_slice %4 {offsets = [0, 0, 0], sizes = [2, 1, 128], strides = [1, 1, 1]} : vector<2x7x128xf32> to vector<2x1x128xf32>
    %6 = vector.shape_cast %5 : vector<2x1x128xf32> to vector<2x128xf32>
    %7 = vector.extract_strided_slice %3 {offsets = [0, 0, 0], sizes = [2, 1, 128], strides = [1, 1, 1]} : vector<2x7x128xf32> to vector<2x1x128xf32>
    %8 = vector.shape_cast %7 : vector<2x1x128xf32> to vector<2x128xf32>
    %cst = arith.constant 0.00999999977 : f32
    %9 = vector.broadcast %cst : f32 to vector<2x128xf32>
    %10 = arith.cmpf ogt, %6, %9 : vector<2x128xf32>
    %11 = arith.extui %10 : vector<2x128xi1> to vector<2x128xi32>
    %12 = arith.sitofp %11 : vector<2x128xi32> to vector<2x128xf32>
    %13 = math.absf %8 : vector<2x128xf32>
    %cst_6 = arith.constant 0.000000e+00 : f32
    %14 = vector.broadcast %cst_6 : f32 to vector<2x128xf32>
    %15 = arith.subf %14, %13 : vector<2x128xf32>
    %16 = math.exp %15 : vector<2x128xf32>
    %17 = math.log1p %16 : vector<2x128xf32>
    %cst_7 = arith.constant 0.000000e+00 : f32
    %18 = vector.broadcast %cst_7 : f32 to vector<2x128xf32>
    %19 = arith.minimumf %8, %18 : vector<2x128xf32>
    %20 = arith.subf %19, %17 : vector<2x128xf32>
    %cst_8 = arith.constant 0.000000e+00 : f32
    %21 = vector.broadcast %cst_8 : f32 to vector<2x128xf32>
    %22 = arith.subf %21, %8 : vector<2x128xf32>
    %cst_9 = arith.constant 0.000000e+00 : f32
    %23 = vector.broadcast %cst_9 : f32 to vector<2x128xf32>
    %24 = arith.minimumf %22, %23 : vector<2x128xf32>
    %25 = arith.subf %24, %17 : vector<2x128xf32>
    %26 = arith.mulf %12, %6 : vector<2x128xf32>
    %27 = arith.mulf %26, %20 : vector<2x128xf32>
    %cst_10 = arith.constant 1.000000e+00 : f32
    %28 = vector.broadcast %cst_10 : f32 to vector<2x128xf32>
    %29 = arith.subf %28, %26 : vector<2x128xf32>
    %30 = arith.mulf %29, %25 : vector<2x128xf32>
    %31 = arith.addf %27, %30 : vector<2x128xf32>
    %32 = math.exp %31 : vector<2x128xf32>
    %cst_11 = arith.constant 1.000000e+00 : f32
    %33 = vector.broadcast %cst_11 : f32 to vector<2x128xf32>
    %34 = arith.subf %33, %32 : vector<2x128xf32>
    %35 = arith.mulf %34, %34 : vector<2x128xf32>
    %cst_12 = arith.constant 0.000000e+00 : f32
    %36 = vector.broadcast %cst_12 : f32 to vector<2x128xf32>
    %37 = arith.subf %36, %35 : vector<2x128xf32>
    %38 = arith.mulf %37, %31 : vector<2x128xf32>
    %39 = arith.mulf %12, %6 : vector<2x128xf32>
    %c0_13 = arith.constant 0 : index
    %c0_14 = arith.constant 0 : index
    %c0_15 = arith.constant 0 : index
    %c0_16 = arith.constant 0 : index
    %40 = vector.load %arg4[%c0_13, %c0_14, %c0_15, %c0_16] : memref<1x5x2x128xf32, #tpu.memory_space<vmem>>, vector<1x1x2x128xf32>
    %41 = vector.shape_cast %40 : vector<1x1x2x128xf32> to vector<2x128xf32>
    %42 = arith.addf %41, %38 : vector<2x128xf32>
    %c0_17 = arith.constant 0 : index
    %c0_18 = arith.constant 0 : index
    %c0_19 = arith.constant 0 : index
    %c0_20 = arith.constant 0 : index
    %43 = vector.load %arg4[%c0_17, %c0_18, %c0_19, %c0_20] : memref<1x5x2x128xf32, #tpu.memory_space<vmem>>, vector<1x1x2x128xf32>
    %44 = vector.shape_cast %43 : vector<1x1x2x128xf32> to vector<2x128xf32>
    %45 = vector.shape_cast %42 : vector<2x128xf32> to vector<1x1x2x128xf32>
    tpu.vector_store %arg4[%c0_17, %c0_18, %c0_19, %c0_20], %45 {strides = array<i32>} : memref<1x5x2x128xf32, #tpu.memory_space<vmem>>, vector<1x1x2x128xf32>,
    %c0_21 = arith.constant 0 : index
    %c1 = arith.constant 1 : index
    %c0_22 = arith.constant 0 : index
    %c0_23 = arith.constant 0 : index
    %46 = vector.load %arg4[%c0_21, %c1, %c0_22, %c0_23] : memref<1x5x2x128xf32, #tpu.memory_space<vmem>>, vector<1x1x2x128xf32>
    %47 = vector.shape_cast %46 : vector<1x1x2x128xf32> to vector<2x128xf32>
    %48 = arith.addf %47, %12 : vector<2x128xf32>
    %c0_24 = arith.constant 0 : index
    %c1_25 = arith.constant 1 : index
    %c0_26 = arith.constant 0 : index
    %c0_27 = arith.constant 0 : index
    %49 = vector.load %arg4[%c0_24, %c1_25, %c0_26, %c0_27] : memref<1x5x2x128xf32, #tpu.memory_space<vmem>>, vector<1x1x2x128xf32>
    %50 = vector.shape_cast %49 : vector<1x1x2x128xf32> to vector<2x128xf32>
    %51 = vector.shape_cast %48 : vector<2x128xf32> to vector<1x1x2x128xf32>
    tpu.vector_store %arg4[%c0_24, %c1_25, %c0_26, %c0_27], %51 {strides = array<i32>} : memref<1x5x2x128xf32, #tpu.memory_space<vmem>>, vector<1x1x2x128xf32>,
    %c0_28 = arith.constant 0 : index
    %c2 = arith.constant 2 : index
    %c0_29 = arith.constant 0 : index
    %c0_30 = arith.constant 0 : index
    %52 = vector.load %arg4[%c0_28, %c2, %c0_29, %c0_30] : memref<1x5x2x128xf32, #tpu.memory_space<vmem>>, vector<1x1x2x128xf32>
    %53 = vector.shape_cast %52 : vector<1x1x2x128xf32> to vector<2x128xf32>
    %54 = vector.extract_strided_slice %3 {offsets = [0, 1, 0], sizes = [2, 2, 128], strides = [1, 1, 1]} : vector<2x7x128xf32> to vector<2x2x128xf32>
    %55 = vector.extract_strided_slice %4 {offsets = [0, 1, 0], sizes = [2, 2, 128], strides = [1, 1, 1]} : vector<2x7x128xf32> to vector<2x2x128xf32>
    %56 = arith.subf %54, %55 : vector<2x2x128xf32>
    %57 = arith.mulf %56, %56 : vector<2x2x128xf32>
    %cst_31 = arith.constant dense<0.000000e+00> : vector<2x128xf32>
    %58 = vector.multi_reduction <add>, %57, %cst_31 [1] : vector<2x2x128xf32> to vector<2x128xf32>
    %59 = arith.mulf %39, %58 : vector<2x128xf32>
    %60 = arith.addf %53, %59 : vector<2x128xf32>
    %c0_32 = arith.constant 0 : index
    %c2_33 = arith.constant 2 : index
    %c0_34 = arith.constant 0 : index
    %c0_35 = arith.constant 0 : index
    %61 = vector.load %arg4[%c0_32, %c2_33, %c0_34, %c0_35] : memref<1x5x2x128xf32, #tpu.memory_space<vmem>>, vector<1x1x2x128xf32>
    %62 = vector.shape_cast %61 : vector<1x1x2x128xf32> to vector<2x128xf32>
    %63 = vector.shape_cast %60 : vector<2x128xf32> to vector<1x1x2x128xf32>
    tpu.vector_store %arg4[%c0_32, %c2_33, %c0_34, %c0_35], %63 {strides = array<i32>} : memref<1x5x2x128xf32, #tpu.memory_space<vmem>>, vector<1x1x2x128xf32>,
    %c0_36 = arith.constant 0 : index
    %c3 = arith.constant 3 : index
    %c0_37 = arith.constant 0 : index
    %c0_38 = arith.constant 0 : index
    %64 = vector.load %arg4[%c0_36, %c3, %c0_37, %c0_38] : memref<1x5x2x128xf32, #tpu.memory_space<vmem>>, vector<1x1x2x128xf32>
    %65 = vector.shape_cast %64 : vector<1x1x2x128xf32> to vector<2x128xf32>
    %66 = vector.extract_strided_slice %3 {offsets = [0, 3, 0], sizes = [2, 2, 128], strides = [1, 1, 1]} : vector<2x7x128xf32> to vector<2x2x128xf32>
    %67 = vector.extract_strided_slice %4 {offsets = [0, 3, 0], sizes = [2, 2, 128], strides = [1, 1, 1]} : vector<2x7x128xf32> to vector<2x2x128xf32>
    %68 = arith.subf %66, %67 : vector<2x2x128xf32>
    %69 = arith.mulf %68, %68 : vector<2x2x128xf32>
    %cst_39 = arith.constant dense<0.000000e+00> : vector<2x128xf32>
    %70 = vector.multi_reduction <add>, %69, %cst_39 [1] : vector<2x2x128xf32> to vector<2x128xf32>
    %71 = arith.mulf %39, %70 : vector<2x128xf32>
    %72 = arith.addf %65, %71 : vector<2x128xf32>
    %c0_40 = arith.constant 0 : index
    %c3_41 = arith.constant 3 : index
    %c0_42 = arith.constant 0 : index
    %c0_43 = arith.constant 0 : index
    %73 = vector.load %arg4[%c0_40, %c3_41, %c0_42, %c0_43] : memref<1x5x2x128xf32, #tpu.memory_space<vmem>>, vector<1x1x2x128xf32>
    %74 = vector.shape_cast %73 : vector<1x1x2x128xf32> to vector<2x128xf32>
    %75 = vector.shape_cast %72 : vector<2x128xf32> to vector<1x1x2x128xf32>
    tpu.vector_store %arg4[%c0_40, %c3_41, %c0_42, %c0_43], %75 {strides = array<i32>} : memref<1x5x2x128xf32, #tpu.memory_space<vmem>>, vector<1x1x2x128xf32>,
    %c0_44 = arith.constant 0 : index
    %c4 = arith.constant 4 : index
    %c0_45 = arith.constant 0 : index
    %c0_46 = arith.constant 0 : index
    %76 = vector.load %arg4[%c0_44, %c4, %c0_45, %c0_46] : memref<1x5x2x128xf32, #tpu.memory_space<vmem>>, vector<1x1x2x128xf32>
    %77 = vector.shape_cast %76 : vector<1x1x2x128xf32> to vector<2x128xf32>
    %78 = vector.extract_strided_slice %3 {offsets = [0, 5, 0], sizes = [2, 2, 128], strides = [1, 1, 1]} : vector<2x7x128xf32> to vector<2x2x128xf32>
    %79 = vector.extract_strided_slice %4 {offsets = [0, 5, 0], sizes = [2, 2, 128], strides = [1, 1, 1]} : vector<2x7x128xf32> to vector<2x2x128xf32>
    %80 = arith.subf %78, %79 : vector<2x2x128xf32>
    %81 = arith.mulf %80, %80 : vector<2x2x128xf32>
    %cst_47 = arith.constant dense<0.000000e+00> : vector<2x128xf32>
    %82 = vector.multi_reduction <add>, %81, %cst_47 [1] : vector<2x2x128xf32> to vector<2x128xf32>
    %83 = arith.mulf %39, %82 : vector<2x128xf32>
    %84 = arith.addf %77, %83 : vector<2x128xf32>
    %c0_48 = arith.constant 0 : index
    %c4_49 = arith.constant 4 : index
    %c0_50 = arith.constant 0 : index
    %c0_51 = arith.constant 0 : index
    %85 = vector.load %arg4[%c0_48, %c4_49, %c0_50, %c0_51] : memref<1x5x2x128xf32, #tpu.memory_space<vmem>>, vector<1x1x2x128xf32>
    %86 = vector.shape_cast %85 : vector<1x1x2x128xf32> to vector<2x128xf32>
    %87 = vector.shape_cast %84 : vector<2x128xf32> to vector<1x1x2x128xf32>
    tpu.vector_store %arg4[%c0_48, %c4_49, %c0_50, %c0_51], %87 {strides = array<i32>} : memref<1x5x2x128xf32, #tpu.memory_space<vmem>>, vector<1x1x2x128xf32>,
    return
  }
  func.func @transform_0(%arg0: i32, %arg1: i32) -> (i32, i32, i32) {
    %c1_i32 = arith.constant 1 : i32
    %0 = arith.muli %arg0, %c1_i32 : i32
    %1 = arith.addi %0, %arg1 : i32
    %c0_i32 = arith.constant 0 : i32
    %c0_i32_0 = arith.constant 0 : i32
    %c0_i32_1 = arith.constant 0 : i32
    return %c0_i32, %c0_i32_0, %1 : i32, i32, i32
  }
  func.func @transform_1(%arg0: i32, %arg1: i32) -> (i32, i32, i32) {
    %c1_i32 = arith.constant 1 : i32
    %0 = arith.muli %arg0, %c1_i32 : i32
    %1 = arith.addi %0, %arg1 : i32
    %c0_i32 = arith.constant 0 : i32
    %c0_i32_0 = arith.constant 0 : i32
    %c0_i32_1 = arith.constant 0 : i32
    return %c0_i32, %c0_i32_0, %1 : i32, i32, i32
  }
  func.func @transform_2(%arg0: i32, %arg1: i32) -> (i32, i32, i32, i32) {
    %c0_i32 = arith.constant 0 : i32
    %c0_i32_0 = arith.constant 0 : i32
    %c0_i32_1 = arith.constant 0 : i32
    %c0_i32_2 = arith.constant 0 : i32
    return %arg0, %c0_i32, %c0_i32_0, %c0_i32_1 : i32, i32, i32, i32
  }
}

</mosaic_0001>

<bundles_post_ra>
// kernel: tpu_custom_call.1
= control target key start
LH: loop header
LB: loop body
LE: loop exit
PB: predicated region body
PF: predicated region fallthrough
CT: control target
= control target key end

     0   :  { %7 = vsyncpa [#allocation5], 0  ;;  %s953_s0 = inlined_call_operand.vmem [shape: f32[2,7,256], index: 0, kind: input, shape index: {}]   ;;  %s954_s1 = inlined_call_operand.vmem [shape: f32[2,7,256], index: 1, kind: input, shape index: {}]   ;;  %s955_s2 = inlined_call_operand.hbm [shape: f32[2,5,2,128], index: 2, kind: output, shape index: {}]  }
   0x1   :  { %9 = vsyncpa [#allocation5 + $0x1], 0  ;;  %s752_s9 = smov 0   ;;  %s754_s10 = smov 0  }
   0x2   :  { %s756_s11 = smov 0   ;;  %s758_s12 = smov 0  }
   0x3   :  { %s760_s13 = smov 0   ;;  %s762_s14 = smov 0  }
   0x4 LB: > { %s559_s15 = sadd.s32 4294967295, %s731_s14   ;;  %s560_s16 = sadd.s32 4294967294, %s731_s14   ;;  %s731_s14 = sphi %s762_s14, %s15_s14   ;;  %s727_s13 = sphi %s760_s13, %s963_s13   ;;  %s723_s12 = sphi %s758_s12, %s962_s12   ;;  %s719_s11 = sphi %s756_s11, %s961_s11   ;;  %s715_s10 = sphi %s754_s10, %s960_s10   ;;  %s711_s9 = sphi %s752_s9, %s959_s9  }
   0x5   : > { %s27_s17 = sadd.s32 1, %s727_s13  ;;  %s36_s18 = sadd.s32 1, %s719_s11 }
   0x6   : > { %p29_p0 = scmp.ge.s32.totalorder %s27_s17, 2  ;;  %p43_p1 = scmp.ne.s32.totalorder %s719_s11, %s715_s10 }
   0x7   : > { %p44_p2 = scmp.eq.s32.totalorder %s731_s14, 0  ;;  %p101_p3 = scmp.eq.s32.totalorder %s559_s15, 1 }
   0x8   : > { %s965_s17 = smov (%p29_p0, %s27_s17), 0  ;;  %p106_p6 = scmp.ne.s32.totalorder %s715_s10, %s711_s9 }
   0x9   : > { %p791_p4 = por %p44_p2, %p43_p1  ;;  %p795_p5 = por %p101_p3, %p43_p1 }
   0xa   : > { %s33_s21 = ssub.s32 %s727_s13, %s965_s17  ;;  %p107_p8 = scmp.eq.s32.totalorder %s560_s16, 1 }
   0xb   : > { %p34_p7 = scmp.eq.s32.totalorder %s33_s21, 0  ;;  %p562_p10 = scmp.ge.s32.totalorder %s731_s14, 2 }
   0xc   : > { %p806_p9 = por %p107_p8, %p106_p6 }
   0xd   : > { %s804_s22 = scalar_select %p34_p7, %s719_s11, %s36_s18  }
   0xe   : > { %123 = sbr.rel (%p562_p10) target bundleno = 29 (0x1d), region = 16 }
  0x13   : > { %126 = sbr.rel (!%p791_p4) target bundleno = 24 (0x18), region = 20  ;;  %s128_s24 = sand.u32 (%p791_p4), 1, %s719_s11  }
  0x14   : > { %s564_s25 = sshll.u32 (%p791_p4), %s727_s13, 3  ;;  %s563_s26 = sshll.u32 (%p791_p4), %s128_s24, 4 }
  0x15   : > { %s133_s29 = scalar_lea.vmem (%p791_p4), %s953_s0, %s564_s25  ;;  %s130_s30 = scalar_lea.vmem (%p791_p4), [#allocation2], %s563_s26 }
  0x16   : > { %v164_v0 = vld [vmem:[%s133_s29] sm:$0xff] (%p791_p4)  ;;  %v166_v1 = vld [vmem:[%s133_s29 + $0x10] sm:$0xff] (%p791_p4) }
  0x17   : > { %165 = vst [vmem:[%s130_s30] sm:$0xff] (%p791_p4), %v164_v0  ;;  %167 = vst [vmem:[%s130_s30 + $0x8] sm:$0xff] (%p791_p4), %v166_v1 }
  0x18 PF: > { %173 = sbr.rel (!%p791_p4) target bundleno = 29 (0x1d), region = 58  ;;  %s175_s3 = sand.u32 (%p791_p4), 1, %s719_s11  }
  0x19   : > { %s566_s4 = sshll.u32 (%p791_p4), %s727_s13, 3  ;;  %s565_s5 = sshll.u32 (%p791_p4), %s175_s3, 4 }
  0x1a   : > { %s180_s8 = scalar_lea.vmem (%p791_p4), %s954_s1, %s566_s4  ;;  %s177_s15 = scalar_lea.vmem (%p791_p4), [#allocation3], %s565_s5 }
  0x1b   : > { %v211_v2 = vld [vmem:[%s180_s8] sm:$0xff] (%p791_p4)  ;;  %v213_v3 = vld [vmem:[%s180_s8 + $0x10] sm:$0xff] (%p791_p4) }
  0x1c   : > { %212 = vst [vmem:[%s177_s15] sm:$0xff] (%p791_p4), %v211_v2  ;;  %214 = vst [vmem:[%s177_s15 + $0x8] sm:$0xff] (%p791_p4), %v213_v3 }
  0x1d PF: > { %p567_p11 = scmp.ge.s32.totalorder %s731_s14, 1  ;;  %p219_p12 = scmp.lt.s32.totalorder %s731_s14, 3 }
  0x1f   : > { %p220_p13 = pnand %p567_p11, %p219_p12 }
  0x20   : > { %s830_s16 = sand.u32 (!%p220_p13), 1, %s715_s10   ;;  %s584_s26 = smul.u32 (!%p220_p13), 160, %s723_s12 }
  0x21   : > { %223 = sbr.rel (%p220_p13) target bundleno = 130 (0x82), region = 96  ;;  %s568_s18 = sshll.u32 (!%p220_p13), %s830_s16, 4 }
  0x22   : > { %s583_s19 = smul.u32 (!%p220_p13), 10, %s830_s16  ;;  %s235_s21 = scalar_lea.vmem (!%p220_p13), [#allocation3], %s568_s18 }
  0x23   : > { %s228_s25 = scalar_lea.vmem (!%p220_p13), [#allocation2], %s568_s18  ;;  %s902_s30 = scalar_lea.hbm (!%p220_p13), %s955_s2, %s584_s26 }
  0x24   : > { %s838_s24 = scalar_lea.vmem (!%p220_p13), [#allocation4], %s583_s19  ;;  %s450_s3 = scalar_lea.sflag (!%p220_p13), [#allocation5], %s830_s16 }
  0x25   : > { %s463_s27 = sshll.u32 (!%p220_p13), %s838_s24, 4  ;;  %s734_s12 = smov (!%p220_p13), [#allocation4]   ;;  %s904_s27 = int_to_ptr.vmem [resolvable:$true] %s463_s27 }
  0x26   : > { %v834_v4 = vld [vmem:[%s235_s21] sm:$0x7f]  ;;  %v836_v5 = vld [vmem:[%s235_s21 + $0x8] sm:$0x7f]  ;;  %v733_v6 = vmov 0.0   ;;  %vm341_vm2 = vcmask 1041409  }
  0x27   : > { %264 = vst [vmem:[%s838_s24] sm:$0x3] %v733_v6  ;;  %vm274_vm0 = vcmp.gt.f32.partialorder %v836_v5, 0.01  ;;  %265 = vst [vmem:[%s838_s24 + $0x2] sm:$0x3] %v733_v6  ;;  %vm367_vm3 = vcmask 1041408  }
  0x28   : > { %266 = vst [vmem:[%s838_s24 + $0x4] sm:$0x3] %v733_v6  ;;  %267 = vst [vmem:[%s838_s24 + $0x6] sm:$0x3] %v733_v6  ;;  %v846_v7 = vld [vmem:[%s228_s25] sm:$0x7f] }
  0x29   : > { %268 = vst [vmem:[%s838_s24 + $0x8] sm:$0x3] %v733_v6  ;;  %v848_v8 = vld [vmem:[%s228_s25 + $0x8] sm:$0x7f]  ;;  %v279_v9 = vand.u32 2147483647, %v846_v7  ;;  %v357_v11 = vsub.f32 %v846_v7, %v834_v4 }
  0x2a   : > { %vm273_vm1 = vcmp.gt.f32.partialorder %v834_v4, 0.01  ;;  %v280_v10 = vand.u32 2147483647, %v848_v8  ;;  %v571_v12 = vsel %vm274_vm0, 1.0, %v733_v6  ;;  %v358_v18 = vsub.f32 %v848_v8, %v836_v5  ;;  %s655_s4 = scalar_lea.vmem %s904_s27, 160 }
  0x2b   : > { %v281_v13 = vsub.f32 0.0, %v279_v9  ;;  %v350_v15 = vrot.slane %v571_v12, 7  ;;  %v570_v16 = vsel %vm273_vm1, 1.0, %v733_v6  ;;  %v359_v21 = vmul.f32 %v357_v11, %v357_v11  ;;  %p656_p0 = scmp.ne.s32.totalorder %s904_s27, %s655_s4  ;;  %s659_s5 = sshll.u32 %s734_s12, 4  ;;  %s660_s5 = int_to_ptr.vmem [resolvable:$false] %s659_s5 }
  0x2c   : > { %v282_v14 = vsub.f32 0.0, %v280_v10  ;;  %v360_v23 = vmul.f32 %v358_v18, %v358_v18  ;;  %v867_v61 = vmul.f32 %v570_v16, %v834_v4  ;;  %v870_v9 = vmul.f32 %v571_v12, %v836_v5  ;;  %s661_s6 = scalar_lea.vmem %s660_s5, 320  ;;  %p662_p3 = scmp.lt.s32.totalorder %s904_s27, %s660_s5 }
  0x2d   : > { %v283_v17 = vmul.f32 1.442695, %v281_v13  ;;  %v351_v20 = vsel %vm341_vm2, %v350_v15, %v570_v16  ;;  %v363_v25 = vrot.slane %v359_v21, 1  ;;  %v393_v26 = vrot.slane %v359_v21, 3  ;;  %p657_p1 = pnand %p656_p0, %p795_p5  ;;  %p663_p4 = scmp.lt.s32.totalorder %s661_s6, %s655_s4 }
  0x2e   : > { %v285_v19 = vmul.f32 1.442695, %v282_v14  ;;  %v572_v22 = vld [vmem:[%s838_s24 + $0x2] sm:$0x3]  ;;  %v364_v27 = vrot.slane %v360_v23, 1  ;;  %v394_v28 = vrot.slane %v360_v23, 3 }
  0x2f   : > { %643 = vpow2.f32 %v283_v17  ;;  %v353_v24 = vadd.f32 %v572_v22, %v351_v20  ;;  %v422_v29 = vrot.slane %v359_v21, 5  ;;  %v423_v30 = vrot.slane %v360_v23, 5  ;;  %v574_v18 = vld [vmem:[%s838_s24 + $0x4] sm:$0x3]  ;;  %p658_p2 = pneg %p657_p1  ;;  %p664_p6 = por %p663_p4, %p662_p3 }
  0x30   : > { %645 = vpow2.f32 %v285_v19  ;;  %v368_v31 = vsel %vm367_vm3, %v363_v25, 0.0  ;;  %v397_v32 = vsel %vm367_vm3, %v393_v26, 0.0  ;;  %v375_v34 = vsel %vm367_vm3, %v364_v27, 0.0  ;;  %v576_v27 = vld [vmem:[%s838_s24 + $0x6] sm:$0x3] }
  0x31   : > { %573 = vst [vmem:[%s838_s24 + $0x2] sm:$0x3] %v353_v24  ;;  %v369_v33 = vrot.slane %v368_v31, 4  ;;  %v398_v35 = vrot.slane %v397_v32, 4  ;;  %v404_v36 = vsel %vm367_vm3, %v394_v28, 0.0  ;;  %v376_v37 = vrot.slane %v375_v34, 4  ;;  %p665_p7 = pnand %p664_p6, %p658_p2 }
  0x32   : > { %v405_v38 = vrot.slane %v404_v36, 4  ;;  %v426_v39 = vsel %vm367_vm3, %v422_v29, 0.0  ;;  %v433_v40 = vsel %vm367_vm3, %v423_v30, 0.0 }
  0x33   : > { %v370_v41 = vadd.f32 %v369_v33, %v368_v31  ;;  %v399_v42 = vadd.f32 %v398_v35, %v397_v32  ;;  %v427_v43 = vrot.slane %v426_v39, 4  ;;  %v434_v44 = vrot.slane %v433_v40, 4 }
  0x34   : > { %v377_v45 = vadd.f32 %v376_v37, %v375_v34  ;;  %v406_v46 = vadd.f32 %v405_v38, %v404_v36  ;;  %v309_v32 = vsub.f32 0.0, %v846_v7  ;;  %v578_v37 = vld [vmem:[%s838_s24 + $0x8] sm:$0x3] }
  0x35   : > { %v371_v47 = vrot.slane %v370_v41, 2  ;;  %v400_v48 = vrot.slane %v399_v42, 2  ;;  %v428_v49 = vadd.f32 %v427_v43, %v426_v39  ;;  %v435_v50 = vadd.f32 %v434_v44, %v433_v40 }
  0x36   : > { %v378_v51 = vrot.slane %v377_v45, 2  ;;  %v407_v52 = vrot.slane %v406_v46, 2  ;;  %v310_v40 = vsub.f32 0.0, %v848_v8 }
  0x37   : > { %v372_v53 = vadd.f32 %v371_v47, %v370_v41  ;;  %v401_v54 = vadd.f32 %v400_v48, %v399_v42  ;;  %v429_v55 = vrot.slane %v428_v49, 2  ;;  %v436_v58 = vrot.slane %v435_v50, 2 }
  0x38   : > { %v379_v56 = vadd.f32 %v378_v51, %v377_v45  ;;  %v408_v57 = vadd.f32 %v407_v52, %v406_v46  ;;  %v305_v46 = vmin.f32 %v846_v7, 0.0  ;;  %v311_v47 = vmin.f32 %v309_v32, 0.0 }
  0x39   : > { %v373_v59 = vrot.slane %v372_v53, 1  ;;  %v402_v63 = vrot.slane %v401_v54, 1  ;;  %v430_v6 = vadd.f32 %v429_v55, %v428_v49  ;;  %v437_v13 = vadd.f32 %v436_v58, %v435_v50 }
  0x3a   : > { %v380_v62 = vrot.slane %v379_v56, 1  ;;  %v409_v3 = vrot.slane %v408_v57, 1  ;;  %v306_v50 = vmin.f32 %v848_v8, 0.0  ;;  %v312_v51 = vmin.f32 %v310_v40, 0.0 }
  0x3b   : > { %v374_v2 = vadd.f32 %v373_v59, %v372_v53  ;;  %v403_v15 = vadd.f32 %v402_v63, %v401_v54  ;;  %v431_v17 = vrot.slane %v430_v6, 1  ;;  %v438_v20 = vrot.slane %v437_v13, 1 }
  0x3c   : > { %v644_v60 = vpop.eup %643  ;;  %v381_v11 = vadd.f32 %v380_v62, %v379_v56  ;;  %v410_v16 = vadd.f32 %v409_v3, %v408_v57  ;;  %v319_v53 = vsub.f32 1.0, %v867_v61  ;;  %v320_v55 = vsub.f32 1.0, %v870_v9 }
  0x3d   : > { %v646_v0 = vpop.eup %645  ;;  %v287_v1 = vadd.f32 1.0, %v644_v60  ;;  %v382_v14 = vmul.f32 %v374_v2, %v867_v61  ;;  %v290_v21 = vmul.f32 -0.5, %v644_v60  ;;  %v411_v5 = vmul.f32 %v403_v15, %v867_v61 }
  0x3e   : > { %v296_v10 = vadd.f32 1.0, %v646_v0  ;;  %v383_v4 = vmul.f32 %v381_v11, %v870_v9  ;;  %v412_v12 = vmul.f32 %v410_v16, %v870_v9  ;;  %v432_v22 = vadd.f32 %v431_v17, %v430_v6  ;;  %v337_v17 = vld [vmem:[%s838_s24] sm:$0x3] }
  0x3f   : > { %647 = vlog2.f32 %v287_v1  ;;  %v299_v23 = vmul.f32 -0.5, %v646_v0  ;;  %v439_v25 = vadd.f32 %v438_v20, %v437_v13  ;;  %v291_v31 = vadd.f32 1.0, %v290_v21 }
  0x40   : > { %649 = vlog2.f32 %v296_v10  ;;  %v386_v19 = vrot.slane %v383_v4, 7  ;;  %v415_v28 = vrot.slane %v412_v12, 7  ;;  %v440_v29 = vmul.f32 %v432_v22, %v867_v61 }
  0x41   : > { %v441_v30 = vmul.f32 %v439_v25, %v870_v9  ;;  %v293_v34 = vand.u32 2147483647, %v644_v60  ;;  %v300_v35 = vadd.f32 1.0, %v299_v23  ;;  %v302_v39 = vand.u32 2147483647, %v646_v0 }
  0x42   : > { %v387_v24 = vsel %vm341_vm2, %v386_v19, %v382_v14  ;;  %v416_v33 = vsel %vm341_vm2, %v415_v28, %v411_v5  ;;  %v292_v42 = vmul.f32 %v644_v60, %v291_v31 }
  0x43   : > { %v389_v26 = vadd.f32 %v574_v18, %v387_v24  ;;  %v418_v36 = vadd.f32 %v576_v27, %v416_v33  ;;  %v444_v38 = vrot.slane %v441_v30, 7  ;;  %vm294_vm4 = vcmp.lt.f32.partialorder %v293_v34, 0.0004427343 }
  0x44   : > { %v301_v45 = vmul.f32 %v646_v0, %v300_v35  ;;  %vm303_vm5 = vcmp.lt.f32.partialorder %v302_v39, 0.0004427343 }
  0x45   : > { %575 = vst [vmem:[%s838_s24 + $0x4] sm:$0x3] %v389_v26  ;;  %577 = vst [vmem:[%s838_s24 + $0x6] sm:$0x3] %v418_v36  ;;  %v445_v41 = vsel %vm341_vm2, %v444_v38, %v440_v29 }
  0x46   : > { %v447_v43 = vadd.f32 %v578_v37, %v445_v41 }
  0x48   : > { %579 = vst [vmem:[%s838_s24 + $0x8] sm:$0x3] %v447_v43 }
  0x4c   : > { %v648_v44 = vpop.eup %647 }
  0x4d   : > { %v650_v48 = vpop.eup %649  ;;  %v289_v49 = vmul.f32 0.6931472, %v648_v44 }
  0x4e   : > { %v298_v52 = vmul.f32 0.6931472, %v650_v48 }
  0x4f   : > { %v295_v54 = vsel %vm294_vm4, %v292_v42, %v289_v49 }
  0x50   : > { %v304_v56 = vsel %vm303_vm5, %v301_v45, %v298_v52  ;;  %v307_v57 = vsub.f32 %v305_v46, %v295_v54  ;;  %v313_v58 = vsub.f32 %v311_v47, %v295_v54 }
  0x51   : > { %v308_v59 = vsub.f32 %v306_v50, %v304_v56  ;;  %v314_v60 = vsub.f32 %v312_v51, %v304_v56 }
  0x52   : > { %v317_v7 = vmul.f32 %v867_v61, %v307_v57  ;;  %v321_v62 = vmul.f32 %v319_v53, %v313_v58 }
  0x53   : > { %v318_v63 = vmul.f32 %v870_v9, %v308_v59  ;;  %v322_v0 = vmul.f32 %v320_v55, %v314_v60 }
  0x54   : > { %v323_v8 = vadd.f32 %v321_v62, %v317_v7 }
  0x55   : > { %v324_v1 = vadd.f32 %v322_v0, %v318_v63 }
  0x56   : > { %v325_v2 = vmul.f32 1.442695, %v323_v8 }
  0x57   : > { %v327_v3 = vmul.f32 1.442695, %v324_v1 }
  0x58   : > { %651 = vpow2.f32 %v325_v2 }
  0x59   : > { %653 = vpow2.f32 %v327_v3 }
  0x65   : > { %v652_v6 = vpop.eup %651 }
  0x66   : > { %v654_v10 = vpop.eup %653  ;;  %v329_v11 = vsub.f32 1.0, %v652_v6 }
  0x67   : > { %v330_v13 = vsub.f32 1.0, %v654_v10 }
  0x68   : > { %v331_v61 = vmul.f32 %v329_v11, %v329_v11 }
  0x69   : > { %v332_v14 = vmul.f32 %v330_v13, %v330_v13 }
  0x6a   : > { %v333_v4 = vsub.f32 0.0, %v331_v61 }
  0x6b   : > { %v334_v9 = vsub.f32 0.0, %v332_v14 }
  0x6c   : > { %v335_v15 = vmul.f32 %v333_v4, %v323_v8 }
  0x6d   : > { %v336_v16 = vmul.f32 %v334_v9, %v324_v1 }
  0x6f   : > { %v340_v18 = vrot.slane %v336_v16, 7 }
  0x71   : > { %v342_v19 = vsel %vm341_vm2, %v340_v18, %v335_v15 }
  0x72   : > { %v344_v20 = vadd.f32 %v342_v19, %v337_v17 }
  0x74   : > { %345 = vst [vmem:[%s838_s24] sm:$0x3] %v344_v20 }
  0x75   : > { %668 = shalt.err (!%p665_p7)
}
  0x76   : > { %s669_s7 = scalar_lea.hbm %s902_s30, 160  ;;  %s673_s18 = scalar_lea.hbm %s955_s2, 320 }
  0x77   : > { %p670_p8 = scmp.ne.s32.totalorder %s902_s30, %s669_s7  ;;  %p674_p13 = scmp.lt.s32.totalorder %s902_s30, %s955_s2 }
  0x78   : > { %p675_p0 = scmp.lt.s32.totalorder %s673_s18, %s669_s7 }
  0x79   : > { %p671_p11 = pnand %p670_p8, %p795_p5 }
  0x7a   : > { %p676_p1 = por %p675_p0, %p674_p13 }
  0x7b   : > { %p672_p12 = pneg %p671_p11 }
  0x7d   : > { %p677_p2 = pnand %p676_p1, %p672_p12 }
  0x7f   : > { %680 = shalt.err (!%p677_p2)
}
  0x80   : > { %s735_s24 = smov 32   ;;  %s736_s25 = smov 2  }
  0x81   : > { %585 = dma.vmem_to_hbm [thread:$0]  (%p795_p5), %s904_s27, 160, %s902_s30, %s450_s3, %s735_s24, %s735_s24, %s736_s25  }
  0x82 PF: > { %s478_s26 = sand.u32 1, %s711_s9   ;;  %p588_p3 = pnand %p562_p10, %p806_p9 }
  0x83   : > { %s479_s28 = scalar_lea.sflag [#allocation5], %s478_s26 }
  0x84   : > { %p589_p4 = pneg %p588_p3 }
  0x86   : > { %706 = dma.done.wait (%p589_p4), %s479_s28, 160  }
  0x87   : > { %708 = vsyncadd (%p589_p4), %s479_s28, 4294967136  ;;  %s15_s14 = sadd.s32 1, %s731_s14   ;;  %s959_s9 = smov %s715_s10 }
  0x88   : > { %p12_p6 = scmp.ge.s32.totalorder %s15_s14, 4   ;;  %s960_s10 = smov %s719_s11 }
  0x89   : > { %s961_s11 = smov %s804_s22  ;;  %s962_s12 = smov %s727_s13 }
  0x8a   : > { %s963_s13 = smov %s965_s17  ;;  %14 = sbr.rel (!%p12_p6) target bundleno = 4 (0x4), region = 160 }
  0x8f   :  { %484 = vsyncpa [#allocation5], 1 }
  0x90   :  { %486 = vsyncpa [#allocation5 + $0x1], 1 }

</bundles_post_ra>
